<compile_context>
chip_gen: v6e
topology: v6e:2x2x1
jax: 0.10.0
libtpu: 0.0.40
codegen_flags: <defaults>
</compile_context>

<pallas_src>
import functools

import jax
import jax.numpy as jnp
from jax.experimental import pallas as pl
from jax.experimental.pallas import tpu as pltpu


def _fast_glu_kernel(x_ref, wg_ref, wv_ref, bg_ref, bv_ref, out_ref,
                     acc_g_ref, acc_v_ref):
    # x_ref:   (TM, TK)  bf16 activation tile
    # wg_ref:  (TK, TN)  bf16 gate-weight tile (K-major, MXU-ready)
    # wv_ref:  (TK, TN)  bf16 value-weight tile
    # bg_ref:  (1, TN)   f32 gate bias
    # bv_ref:  (1, TN)   f32 value bias
    # out_ref: (TM, TN)
    # acc_*:   (TM, TN)  f32 accumulators, resident across the K grid axis
    k = pl.program_id(2)

    @pl.when(k == 0)
    def _():
        acc_g_ref[...] = jnp.zeros_like(acc_g_ref)
        acc_v_ref[...] = jnp.zeros_like(acc_v_ref)

    x = x_ref[...]
    acc_g_ref[...] += jnp.dot(x, wg_ref[...], preferred_element_type=jnp.float32)
    acc_v_ref[...] += jnp.dot(x, wv_ref[...], preferred_element_type=jnp.float32)

    @pl.when(k == pl.num_programs(2) - 1)
    def _():
        gate = acc_g_ref[...] + bg_ref[...]
        val = acc_v_ref[...] + bv_ref[...]
        # sigmoid(g) == 0.5 * tanh(0.5 * g) + 0.5: one EUP transcendental,
        # exact, and no f32 exp overflow for very negative gates.
        sig = 0.5 * jnp.tanh(0.5 * gate) + 0.5
        out_ref[...] = (val * sig).astype(out_ref.dtype)


def _ceil_to(x, m):
    return (x + m - 1) // m * m


@functools.partial(jax.jit, static_argnames=("block_m", "block_n", "block_k"))
def fast_glu(x, weight, bias, *, block_m=512, block_n=512, block_k=1024):
    """FastGLU forward.

    x:      [B, D]
    weight: [2*D, D]  (PyTorch nn.Linear layout: rows [:D]=gate, [D:]=value)
    bias:   [2*D]
    returns [B, D] in x.dtype
    """
    B, D = x.shape
    assert weight.shape == (2 * D, D) and bias.shape == (2 * D,)
    assert block_m % 8 == 0, "block_m must be a multiple of 8"
    assert block_n % 128 == 0, "block_n must be a multiple of 128"
    assert block_k % 128 == 0, "block_k must be a multiple of 128"

    out_dtype = x.dtype
    compute_dtype = jnp.bfloat16

    # Aligned problem extents.
    Bal = _ceil_to(B, 8)
    Dal = _ceil_to(D, 128)

    bm = min(block_m, Bal)
    bn = min(block_n, Dal)
    bk = min(block_k, Dal)

    # v7x megacore: keep >= 2 output tiles across the parallel axes so both
    # TensorCores get work (harmless on 1-TC v5e/v6e).
    if (pl.cdiv(Bal, bm) * pl.cdiv(Dal, bn)) < 2:
        if Dal >= 256:
            bn = max(128, (Dal // 2) // 128 * 128)
        elif Bal >= 16:
            bm = max(8, (Bal // 2) // 8 * 8)

    Bp = _ceil_to(B, bm)
    Dn_p = _ceil_to(D, bn)   # output-feature (N) extent, padded
    Dk_p = _ceil_to(D, bk)   # contraction (K) extent, padded

    # bf16 operands for the MXU (f32 accumulation in the kernel).  The weight
    # is re-laid out K-major once per call; XLA fuses it with the cast/pad and
    # it amortizes over all batch tiles and K steps.
    xc = x.astype(compute_dtype)
    wg = weight[:D, :].T.astype(compute_dtype)     # [K, N] gate
    wv = weight[D:, :].T.astype(compute_dtype)     # [K, N] value
    bg = bias[:D].astype(jnp.float32).reshape(1, D)
    bv = bias[D:].astype(jnp.float32).reshape(1, D)

    # Pad only when needed (no-op for 128/8-aligned production shapes).
    if (Bp, Dk_p) != (B, D):
        xc = jnp.pad(xc, ((0, Bp - B), (0, Dk_p - D)))
    if (Dk_p, Dn_p) != (D, D):
        wg = jnp.pad(wg, ((0, Dk_p - D), (0, Dn_p - D)))
        wv = jnp.pad(wv, ((0, Dk_p - D), (0, Dn_p - D)))
    if Dn_p != D:
        bg = jnp.pad(bg, ((0, 0), (0, Dn_p - D)))
        bv = jnp.pad(bv, ((0, 0), (0, Dn_p - D)))

    grid = (Bp // bm, Dn_p // bn, Dk_p // bk)

    out_itemsize = jnp.dtype(out_dtype).itemsize
    # Double-buffered input/output tiles + two f32 accumulators (+headroom).
    vmem_est = (2 * bm * bk * 2            # x tiles (bf16)
                + 2 * 2 * bk * bn * 2      # wg + wv tiles (bf16)
                + 2 * bm * bn * out_itemsize
                + 2 * bm * bn * 4          # f32 accumulators
                + 2 * 2 * bn * 4)          # bias tiles
    vmem_limit = int(min(max(vmem_est * 5 // 4 + (1 << 20), 32 << 20), 56 << 20))

    cost = pl.CostEstimate(
        flops=2 * Bp * Dk_p * (2 * Dn_p),
        transcendentals=Bp * Dn_p,
        bytes_accessed=(Bp * Dk_p * 2 + 2 * Dk_p * Dn_p * 2
                        + 2 * Dn_p * 4 + Bp * Dn_p * out_itemsize),
    )

    out = pl.pallas_call(
        _fast_glu_kernel,
        out_shape=jax.ShapeDtypeStruct((Bp, Dn_p), out_dtype),
        grid_spec=pltpu.PrefetchScalarGridSpec(
            num_scalar_prefetch=0,
            grid=grid,
            in_specs=[
                pl.BlockSpec((bm, bk), lambda i, j, k: (i, k)),
                pl.BlockSpec((bk, bn), lambda i, j, k: (k, j)),
                pl.BlockSpec((bk, bn), lambda i, j, k: (k, j)),
                pl.BlockSpec((1, bn), lambda i, j, k: (0, j)),
                pl.BlockSpec((1, bn), lambda i, j, k: (0, j)),
            ],
            out_specs=pl.BlockSpec((bm, bn), lambda i, j, k: (i, j)),
            scratch_shapes=[pltpu.VMEM((bm, bn), jnp.float32),
                            pltpu.VMEM((bm, bn), jnp.float32)],
        ),
        compiler_params=pltpu.CompilerParams(
            dimension_semantics=("parallel", "parallel", "arbitrary"),
            vmem_limit_bytes=vmem_limit,
        ),
        cost_estimate=cost,
    )(xc, wg, wv, bg, bv)

    if (Bp, Dn_p) != (B, D):
        out = out[:B, :D]
    return out


def _orthogonal(key, rows, cols, gain):
    # Deterministic orthogonal init (torch.nn.init.orthogonal_ semantics).
    n, m = max(rows, cols), min(rows, cols)
    a = jax.random.normal(key, (n, m), dtype=jnp.float32)
    q, r = jnp.linalg.qr(a)
    q = q * jnp.sign(jnp.diagonal(r))
    if rows < cols:
        q = q.T
    return gain * q[:rows, :cols]


def _reference(x, weight, bias, *, operand_dtype):
    d = x.shape[1]
    xf = x.astype(operand_dtype).astype(jnp.float32)
    wf = weight.astype(operand_dtype).astype(jnp.float32)
    y = jnp.dot(xf, wf.T, precision=jax.lax.Precision.HIGHEST) + bias
    return y[:, d:] * jax.nn.sigmoid(y[:, :d])


if __name__ == "__main__":
    key = jax.random.PRNGKey(0)

    # Case 1: spec-sized tiny shape with the module's own init (orthogonal
    #         weight, zero bias); single-tile grid.
    # Case 2: shape exercising batch/N tiling and the K-reduction accumulator
    #         (grid (2, 2, 2)) plus a nonzero bias.
    cases = [
        (8, 32, True, dict()),
        (16, 256, False, dict(block_m=8, block_n=128, block_k=128)),
    ]
    for batch, in_size, zero_bias, blocks in cases:
        key, kx, kw, kb = jax.random.split(key, 4)
        x = jax.random.normal(kx, (batch, in_size), dtype=jnp.float32)
        weight = _orthogonal(kw, 2 * in_size, in_size, gain=jnp.sqrt(2.0))
        if zero_bias:
            bias = jnp.zeros((2 * in_size,), dtype=jnp.float32)
        else:
            bias = 0.1 * jax.random.normal(kb, (2 * in_size,), dtype=jnp.float32)

        out = jax.block_until_ready(fast_glu(x, weight, bias, **blocks))
        assert out.shape == (batch, in_size)

        # Matched-precision reference (bf16 operands, f32 accumulation):
        ref_bf16 = _reference(x, weight, bias, operand_dtype=jnp.bfloat16)
        assert jnp.allclose(out, ref_bf16, atol=2e-4, rtol=2e-4), (
            batch, in_size, float(jnp.max(jnp.abs(out - ref_bf16))))

        # Full-f32 gold; remaining error is the bounded bf16 operand cast.
        ref_f32 = _reference(x, weight, bias, operand_dtype=jnp.float32)
        assert jnp.allclose(out, ref_f32, atol=6e-2, rtol=6e-2), (
            batch, in_size, float(jnp.max(jnp.abs(out - ref_f32))))

    print("KERNEL_OK")
</pallas_src>

<mosaic_0001>
module attributes {stable_mosaic.version = 11 : i64} {
  func.func @_fast_glu_kernel(%arg0: i32, %arg1: i32, %arg2: i32, %arg3: memref<8x128xbf16, #tpu.memory_space<vmem>>, %arg4: memref<128x128xbf16, #tpu.memory_space<vmem>>, %arg5: memref<128x128xbf16, #tpu.memory_space<vmem>>, %arg6: memref<1x128xf32, #tpu.memory_space<vmem>>, %arg7: memref<1x128xf32, #tpu.memory_space<vmem>>, %arg8: memref<8x128xf32, #tpu.memory_space<vmem>>, %arg9: memref<8x128xf32, #tpu.memory_space<vmem>>, %arg10: memref<8x128xf32, #tpu.memory_space<vmem>>) attributes {dimension_semantics = [#tpu.dimension_semantics<parallel>, #tpu.dimension_semantics<parallel>, #tpu.dimension_semantics<arbitrary>], iteration_bounds = array<i64: 1, 1, 1>, scalar_prefetch = 0 : i64, scratch_operands = 2 : i64, tpu.core_type = #tpu.core_type<tc>, window_params = [{transform_indices = @transform_0, window_bounds = array<i64: 8, 128>}, {transform_indices = @transform_1, window_bounds = array<i64: 128, 128>}, {transform_indices = @transform_2, window_bounds = array<i64: 128, 128>}, {transform_indices = @transform_3, window_bounds = array<i64: 1, 128>}, {transform_indices = @transform_4, window_bounds = array<i64: 1, 128>}, {transform_indices = @transform_5, window_bounds = array<i64: 8, 128>}]} {
    %c0_i32 = arith.constant 0 : i32
    %0 = arith.cmpi eq, %arg2, %c0_i32 : i32
    %1 = arith.extui %0 : i1 to i32
    %c0_i32_0 = arith.constant 0 : i32
    %2 = arith.cmpi ne, %1, %c0_i32_0 : i32
    scf.if %2 {
      %cst_17 = arith.constant 0.000000e+00 : f32
      %17 = vector.broadcast %cst_17 : f32 to vector<8x128xf32>
      %c0_18 = arith.constant 0 : index
      %c0_19 = arith.constant 0 : index
      %18 = vector.load %arg9[%c0_18, %c0_19] : memref<8x128xf32, #tpu.memory_space<vmem>>, vector<8x128xf32>
      tpu.vector_store %arg9[%c0_18, %c0_19], %17 {strides = array<i32>} : memref<8x128xf32, #tpu.memory_space<vmem>>, vector<8x128xf32>,
      %cst_20 = arith.constant 0.000000e+00 : f32
      %19 = vector.broadcast %cst_20 : f32 to vector<8x128xf32>
      %c0_21 = arith.constant 0 : index
      %c0_22 = arith.constant 0 : index
      %20 = vector.load %arg10[%c0_21, %c0_22] : memref<8x128xf32, #tpu.memory_space<vmem>>, vector<8x128xf32>
      tpu.vector_store %arg10[%c0_21, %c0_22], %19 {strides = array<i32>} : memref<8x128xf32, #tpu.memory_space<vmem>>, vector<8x128xf32>,
    } else {
    }
    %c0 = arith.constant 0 : index
    %c0_1 = arith.constant 0 : index
    %3 = vector.load %arg3[%c0, %c0_1] : memref<8x128xbf16, #tpu.memory_space<vmem>>, vector<8x128xbf16>
    %c0_2 = arith.constant 0 : index
    %c0_3 = arith.constant 0 : index
    %4 = vector.load %arg9[%c0_2, %c0_3] : memref<8x128xf32, #tpu.memory_space<vmem>>, vector<8x128xf32>
    %c0_4 = arith.constant 0 : index
    %c0_5 = arith.constant 0 : index
    %5 = vector.load %arg4[%c0_4, %c0_5] : memref<128x128xbf16, #tpu.memory_space<vmem>>, vector<128x128xbf16>
    %cst = arith.constant dense<0.000000e+00> : vector<8x128xf32>
    %6 = tpu.matmul %3, %5, %cst {dimension_numbers = #tpu.dot_dimension_numbers<[1], [0], [0], [1], [0, 0, 1, 1], [], []>} : vector<8x128xbf16>, vector<128x128xbf16>, vector<8x128xf32> -> vector<8x128xf32>
    %7 = arith.addf %4, %6 : vector<8x128xf32>
    %c0_6 = arith.constant 0 : index
    %c0_7 = arith.constant 0 : index
    %8 = vector.load %arg9[%c0_6, %c0_7] : memref<8x128xf32, #tpu.memory_space<vmem>>, vector<8x128xf32>
    tpu.vector_store %arg9[%c0_6, %c0_7], %7 {strides = array<i32>} : memref<8x128xf32, #tpu.memory_space<vmem>>, vector<8x128xf32>,
    %c0_8 = arith.constant 0 : index
    %c0_9 = arith.constant 0 : index
    %9 = vector.load %arg10[%c0_8, %c0_9] : memref<8x128xf32, #tpu.memory_space<vmem>>, vector<8x128xf32>
    %c0_10 = arith.constant 0 : index
    %c0_11 = arith.constant 0 : index
    %10 = vector.load %arg5[%c0_10, %c0_11] : memref<128x128xbf16, #tpu.memory_space<vmem>>, vector<128x128xbf16>
    %cst_12 = arith.constant dense<0.000000e+00> : vector<8x128xf32>
    %11 = tpu.matmul %3, %10, %cst_12 {dimension_numbers = #tpu.dot_dimension_numbers<[1], [0], [0], [1], [0, 0, 1, 1], [], []>} : vector<8x128xbf16>, vector<128x128xbf16>, vector<8x128xf32> -> vector<8x128xf32>
    %12 = arith.addf %9, %11 : vector<8x128xf32>
    %c0_13 = arith.constant 0 : index
    %c0_14 = arith.constant 0 : index
    %13 = vector.load %arg10[%c0_13, %c0_14] : memref<8x128xf32, #tpu.memory_space<vmem>>, vector<8x128xf32>
    tpu.vector_store %arg10[%c0_13, %c0_14], %12 {strides = array<i32>} : memref<8x128xf32, #tpu.memory_space<vmem>>, vector<8x128xf32>,
    %c0_i32_15 = arith.constant 0 : i32
    %14 = arith.cmpi eq, %arg2, %c0_i32_15 : i32
    %15 = arith.extui %14 : i1 to i32
    %c0_i32_16 = arith.constant 0 : i32
    %16 = arith.cmpi ne, %15, %c0_i32_16 : i32
    scf.if %16 {
      %c0_17 = arith.constant 0 : index
      %c0_18 = arith.constant 0 : index
      %17 = vector.load %arg9[%c0_17, %c0_18] : memref<8x128xf32, #tpu.memory_space<vmem>>, vector<8x128xf32>
      %c0_19 = arith.constant 0 : index
      %c0_20 = arith.constant 0 : index
      %18 = vector.load %arg6[%c0_19, %c0_20] : memref<1x128xf32, #tpu.memory_space<vmem>>, vector<1x128xf32>
      %19 = vector.broadcast %18 : vector<1x128xf32> to vector<8x128xf32>
      %20 = arith.addf %17, %19 : vector<8x128xf32>
      %c0_21 = arith.constant 0 : index
      %c0_22 = arith.constant 0 : index
      %21 = vector.load %arg10[%c0_21, %c0_22] : memref<8x128xf32, #tpu.memory_space<vmem>>, vector<8x128xf32>
      %c0_23 = arith.constant 0 : index
      %c0_24 = arith.constant 0 : index
      %22 = vector.load %arg7[%c0_23, %c0_24] : memref<1x128xf32, #tpu.memory_space<vmem>>, vector<1x128xf32>
      %23 = vector.broadcast %22 : vector<1x128xf32> to vector<8x128xf32>
      %24 = arith.addf %21, %23 : vector<8x128xf32>
      %cst_25 = arith.constant 5.000000e-01 : f32
      %25 = vector.broadcast %cst_25 : f32 to vector<8x128xf32>
      %26 = arith.mulf %25, %20 : vector<8x128xf32>
      %27 = math.tanh %26 : vector<8x128xf32>
      %cst_26 = arith.constant 5.000000e-01 : f32
      %28 = vector.broadcast %cst_26 : f32 to vector<8x128xf32>
      %29 = arith.mulf %28, %27 : vector<8x128xf32>
      %cst_27 = arith.constant 5.000000e-01 : f32
      %30 = vector.broadcast %cst_27 : f32 to vector<8x128xf32>
      %31 = arith.addf %29, %30 : vector<8x128xf32>
      %32 = arith.mulf %24, %31 : vector<8x128xf32>
      %c0_28 = arith.constant 0 : index
      %c0_29 = arith.constant 0 : index
      %33 = vector.load %arg8[%c0_28, %c0_29] : memref<8x128xf32, #tpu.memory_space<vmem>>, vector<8x128xf32>
      tpu.vector_store %arg8[%c0_28, %c0_29], %32 {strides = array<i32>} : memref<8x128xf32, #tpu.memory_space<vmem>>, vector<8x128xf32>,
    } else {
    }
    return
  }
  func.func @transform_0(%arg0: i32, %arg1: i32, %arg2: i32) -> (i32, i32) {
    %c0_i32 = arith.constant 0 : i32
    return %arg0, %arg2 : i32, i32
  }
  func.func @transform_1(%arg0: i32, %arg1: i32, %arg2: i32) -> (i32, i32) {
    %c0_i32 = arith.constant 0 : i32
    return %arg2, %arg1 : i32, i32
  }
  func.func @transform_2(%arg0: i32, %arg1: i32, %arg2: i32) -> (i32, i32) {
    %c0_i32 = arith.constant 0 : i32
    return %arg2, %arg1 : i32, i32
  }
  func.func @transform_3(%arg0: i32, %arg1: i32, %arg2: i32) -> (i32, i32) {
    %c0_i32 = arith.constant 0 : i32
    %c0_i32_0 = arith.constant 0 : i32
    return %c0_i32, %arg1 : i32, i32
  }
  func.func @transform_4(%arg0: i32, %arg1: i32, %arg2: i32) -> (i32, i32) {
    %c0_i32 = arith.constant 0 : i32
    %c0_i32_0 = arith.constant 0 : i32
    return %c0_i32, %arg1 : i32, i32
  }
  func.func @transform_5(%arg0: i32, %arg1: i32, %arg2: i32) -> (i32, i32) {
    %c0_i32 = arith.constant 0 : i32
    return %arg0, %arg1 : i32, i32
  }
}

</mosaic_0001>

<bundles_post_ra>
// kernel: fast_glu.1
= control target key start
LH: loop header
LB: loop body
LE: loop exit
PB: predicated region body
PF: predicated region fallthrough
CT: control target
= control target key end

     0   :  { %v403_v1 = vmov 0.0   ;;  %vm404_vm0 = vmmov 0   ;;  %s496_s0 = inlined_call_operand.vmem [shape: bf16[8,128], index: 0, kind: input, shape index: {}]   ;;  %s497_s1 = inlined_call_operand.vmem [shape: bf16[128,128], index: 1, kind: input, shape index: {}]   ;;  %s498_s2 = inlined_call_operand.vmem [shape: bf16[128,128], index: 2, kind: input, shape index: {}]   ;;  %s499_s3 = inlined_call_operand.vmem [shape: f32[1,128], index: 3, kind: input, shape index: {}]   ;;  %s500_s4 = inlined_call_operand.vmem [shape: f32[1,128], index: 4, kind: input, shape index: {}]   ;;  %s501_s5 = inlined_call_operand.hbm [shape: f32[8,128], index: 5, kind: output, shape index: {}]  }
   0x1   :  { %v363_v0 = vld [vmem:[%s497_s1 + $0x38] sm:$0xff]   ;;  %320 = vmatprep.subr.bf16.mxu0 %v403_v1  ;;  %340 = vmatprep.subr.bf16.mxu1 %v403_v1  ;;  %v364_v2 = vld [vmem:[%s497_s1 + $0x30] sm:$0xff]   ;;  %v365_v4 = vld [vmem:[%s497_s1 + $0x28] sm:$0xff]  }
   0x2   :  { %321 = vmatpush3.bf16.msra.mxu0 %v363_v0  ;;  %336 = vmatprep.mubr.msk.bf16.mxu0 %vm404_vm0, %v403_v1  ;;  %v367_v3 = vld [vmem:[%s498_s2 + $0x38] sm:$0xff]   ;;  %v369_v5 = vld [vmem:[%s498_s2 + $0x30] sm:$0xff]   ;;  %v366_v6 = vld [vmem:[%s497_s1 + $0x20] sm:$0xff]  }
   0x3   :  { %322 = vmatprep.subr.bf16.mxu0 %v403_v1  ;;  %356 = vmatprep.mubr.msk.bf16.mxu1 %vm404_vm0, %v403_v1  ;;  %v371_v7 = vld [vmem:[%s498_s2 + $0x28] sm:$0xff]   ;;  %v368_v8 = vld [vmem:[%s497_s1 + $0x18] sm:$0xff]   ;;  %v373_v9 = vld [vmem:[%s498_s2 + $0x20] sm:$0xff]  }
   0x4   :  { %341 = vmatpush3.bf16.msra.mxu1 %v367_v3 }
   0x5   :  { %342 = vmatprep.subr.bf16.mxu1 %v403_v1 }
   0x6   :  { %323 = vmatpush3.bf16.msra.mxu0 %v364_v2 }
   0x7   :  { %324 = vmatprep.subr.bf16.mxu0 %v403_v1 }
   0x8   :  { %343 = vmatpush3.bf16.msra.mxu1 %v369_v5 }
   0x9   :  { %344 = vmatprep.subr.bf16.mxu1 %v403_v1 }
   0xa   :  { %325 = vmatpush3.bf16.msra.mxu0 %v365_v4 }
   0xb   :  { %326 = vmatprep.subr.bf16.mxu0 %v403_v1 }
   0xc   :  { %345 = vmatpush3.bf16.msra.mxu1 %v371_v7 }
   0xd   :  { %346 = vmatprep.subr.bf16.mxu1 %v403_v1 }
   0xe   :  { %327 = vmatpush3.bf16.msra.mxu0 %v366_v6 }
   0xf   :  { %328 = vmatprep.subr.bf16.mxu0 %v403_v1 }
  0x10   :  { %10 = vsyncpa [#allocation5], 0  ;;  %v370_v10 = vld [vmem:[%s497_s1 + $0x10] sm:$0xff]   ;;  %347 = vmatpush3.bf16.msra.mxu1 %v373_v9  ;;  %v375_v11 = vld [vmem:[%s498_s2 + $0x18] sm:$0xff]   ;;  %s405_s28 = smov [#allocation4]  }
  0x11   :  { %348 = vmatprep.subr.bf16.mxu1 %v403_v1  ;;  %v372_v12 = vld [vmem:[%s497_s1 + $0x8] sm:$0xff]   ;;  %v376_v13 = vld [vmem:[%s498_s2 + $0x10] sm:$0xff]   ;;  %v374_v14 = vld [vmem:[%s497_s1] sm:$0xff]  }
  0x12   :  { %329 = vmatpush3.bf16.msra.mxu0 %v368_v8  ;;  %v377_v15 = vld [vmem:[%s498_s2 + $0x8] sm:$0xff]   ;;  %v28_v16 = vld [vmem:[%s496_s0] sm:$0xf] }
  0x13   :  { %330 = vmatprep.subr.bf16.mxu0 %v403_v1  ;;  %v378_v17 = vld [vmem:[%s498_s2] sm:$0xff]  }
  0x14   :  { %349 = vmatpush3.bf16.msra.mxu1 %v375_v11  ;;  %v300_v18 = vld [vmem:[%s499_s3] ss:$0 sm:$0xff]  ;;  %s276_s3 = sshll.u32 %s405_s28, 4  ;;  %s277_s3 = int_to_ptr.vmem [resolvable:$true] %s276_s3 }
  0x15   :  { %350 = vmatprep.subr.bf16.mxu1 %v403_v1  ;;  %v301_v29 = vld [vmem:[%s500_s4] ss:$0 sm:$0xff]  ;;  %s381_s29 = scalar_lea.vmem %s277_s3, 128  ;;  %p386_p1 = scmp.lt.s32.totalorder %s277_s3, %s277_s3 }
  0x16   :  { %331 = vmatpush3.bf16.msra.mxu0 %v370_v10  ;;  %p382_p0 = scmp.ne.s32.totalorder %s277_s3, %s381_s29  ;;  %p387_p2 = scmp.lt.s32.totalorder %s381_s29, %s381_s29 }
  0x17   :  { %332 = vmatprep.subr.bf16.mxu0 %v403_v1 }
  0x18   :  { %351 = vmatpush3.bf16.msra.mxu1 %v376_v13  ;;  %p388_p3 = por %p387_p2, %p386_p1 }
  0x19   :  { %352 = vmatprep.subr.bf16.mxu1 %v403_v1 }
  0x1a   :  { %333 = vmatpush3.bf16.msra.mxu0 %v372_v12  ;;  %p389_p4 = pnand %p388_p3, %p382_p0 }
  0x1b   :  { %334 = vmatprep.subr.bf16.mxu0 %v403_v1 }
  0x1c   :  { %353 = vmatpush3.bf16.msra.mxu1 %v377_v15 }
  0x1d   :  { %354 = vmatprep.subr.bf16.mxu1 %v403_v1 }
  0x1e   :  { %335 = vmatpush3.bf16.msra.mxu0 %v374_v14 }
  0x20   :  { %355 = vmatpush3.bf16.msra.mxu1 %v378_v17 }
  0x21   :  { %337 = vmatmul.mubr.bf16.vlgmr.msra.gmra.mxu0 %v28_v16 }
  0x23   :  { %357 = vmatmul.mubr.bf16.vlgmr.msra.gmra.mxu1 %v28_v16 }
  0xe1   :  { %v128_v19 = vpop.f32.mrf.mxu0 }
  0xe2   :  { %v254_v20 = vadd.f32 %v300_v18, %v128_v19 }
  0xe3   :  { %v338_v21 = vpop.f32.mrf.mxu0  ;;  %v235_v24 = vpop.f32.mrf.mxu1 }
  0xe4   :  { %v264_v22 = vmul.f32 0.5, %v254_v20  ;;  %v263_v31 = vadd.f32 %v301_v29, %v235_v24 }
  0xe5   :  { %v131_v23 = vpop.f32.mrf.mxu0  ;;  %v358_v26 = vpop.f32.mrf.mxu1 }
  0xe6   :  { %379 = vtanh.f32 %v264_v22 }
  0xe7   :  { %v339_v25 = vpop.f32.mrf.mxu0  ;;  %v238_v27 = vpop.f32.mrf.mxu1 }
  0xe9   :  { %v359_v28 = vpop.f32.mrf.mxu1 }
  0xf3   :  { %v380_v30 = vpop.eup %379 }
  0xf4   :  { %v266_v32 = vmul.f32 0.5, %v380_v30 }
  0xf6   :  { %v267_v33 = vadd.f32 0.5, %v266_v32 }
  0xf8   :  { %v268_v34 = vmul.f32 %v267_v33, %v263_v31 }
  0xfa   :  { %269 = vst [vmem:[#allocation4] sm:$0xff] %v268_v34 }
  0xfb   :  { %392 = shalt.err (!%p389_p4)
}
  0xfc   :  { %279 = dma.vmem_to_hbm [thread:$0]  %s277_s3, 128, %s501_s5, [#allocation5]  }
  0xfd   :  { %401 = dma.done.wait [#allocation5], 128  }
  0xfe   :  { %402 = vsyncadd [#allocation5], 4294967168 }
  0xff   :  { %283 = vsyncpa [#allocation5], 1 }

</bundles_post_ra>
